<compile_context>
chip_gen: v7x
topology: tpu7x:2x2x1
jax: 0.10.0
libtpu: 0.0.40
codegen_flags: <defaults>
</compile_context>

<pallas_src>
import functools

import jax
import jax.numpy as jnp
from jax.experimental import pallas as pl
from jax.experimental.pallas import tpu as pltpu


INPUT_DIM = 4
LATENT_DIM = 8
LANES = 128
H1 = 128   # encoder hidden 1 / decoder hidden 2
H2 = 64    # encoder hidden 2 / decoder hidden 1
N_W_BLOCKS = 6
N_B_ROWS = 8


def _round_up(x, m):
    return ((x + m - 1) // m) * m


# ----------------------------------------------------------------------------- kernel


def _cvae_kernel(x_ref, w_ref, b_ref, out_ref, *, input_dim, latent_dim):
    D, L = input_dim, latent_dim
    x = x_ref[...]                                            # (TB, 128)

    def mm(a, i):
        # static (128,128) slice of the packed weight slab -- no runtime cost
        w = w_ref[i * LANES:(i + 1) * LANES, :]
        return jnp.dot(a, w, preferred_element_type=jnp.float32)

    def bias(i):
        return b_ref[i:i + 1, :]                              # (1, 128), broadcasts

    # ---- encoder ----
    h = jnp.maximum(mm(x, 0) + bias(0), 0.0)                  # Linear(2D->128)+ReLU
    h = jnp.maximum(mm(h, 1) + bias(1), 0.0)                  # Linear(128->64)+ReLU

    # fused mu|logvar head: mu at lanes [D:D+L), logvar at [D+L:D+2L), rest exactly 0
    ml = mm(h, 2) + bias(2)

    # ---- reparameterize + build fused decoder input on the VPU ----
    # a : [0:D)=given, [D:D+L)=mu, [D+L:D+2L)=eps*exp(0.5*logvar), rest = 0/ignored rows
    lane = jax.lax.broadcasted_iota(jnp.int32, (1, LANES), 1)
    eps_mask = (lane >= D + L) & (lane < D + 2 * L)
    a = jnp.where(eps_mask, x * jnp.exp(0.5 * ml), jnp.where(lane < D, x, ml))

    # ---- decoder ----
    # single matmul: z @ Wz + given @ Wg, with Wz rows replicated at mu- and eps-lanes
    d = jnp.maximum(mm(a, 3) + bias(3), 0.0)                  # Linear(L+D->64)+ReLU
    d = jnp.maximum(mm(d, 4) + bias(4), 0.0)                  # Linear(64->128)+ReLU

    # recon occupies lanes [0:D) and ml is 0 there -> single dense 128-lane store
    out_ref[...] = mm(d, 5) + bias(5) + ml


# ----------------------------------------------------------------------------- params


def _linear_params(key, fan_in, fan_out):
    # Deterministic, PyTorch-like uniform(-1/sqrt(fan_in), 1/sqrt(fan_in)) init.
    kw, kb = jax.random.split(key)
    bound = 1.0 / jnp.sqrt(jnp.float32(fan_in))
    w = jax.random.uniform(kw, (fan_in, fan_out), jnp.float32, -bound, bound)
    b = jax.random.uniform(kb, (1, fan_out), jnp.float32, -bound, bound)
    return w, b


def init_cvae_params(key, input_dim=INPUT_DIM, latent_dim=LATENT_DIM):
    keys = jax.random.split(key, 7)
    return {
        "e1": _linear_params(keys[0], input_dim * 2, H1),
        "e2": _linear_params(keys[1], H1, H2),
        "mu": _linear_params(keys[2], H2, latent_dim),
        "lv": _linear_params(keys[3], H2, latent_dim),
        "d1": _linear_params(keys[4], latent_dim + input_dim, H2),
        "d2": _linear_params(keys[5], H2, H1),
        "d3": _linear_params(keys[6], H1, input_dim),
    }


def _pack_params(params, input_dim, latent_dim):
    """Pack all weights into one (6*128,128) slab and all biases into one (8,128) slab."""
    D, L = input_dim, latent_dim
    assert L >= D, "layout requires latent_dim >= input_dim"
    assert D + 2 * L <= LANES, "layout requires input_dim + 2*latent_dim <= 128"

    w_e1, b_e1 = params["e1"]
    w_e2, b_e2 = params["e2"]
    w_mu, b_mu = params["mu"]
    w_lv, b_lv = params["lv"]
    w_d1, b_d1 = params["d1"]
    w_d2, b_d2 = params["d2"]
    w_d3, b_d3 = params["d3"]

    W = jnp.zeros((N_W_BLOCKS, LANES, LANES), jnp.float32)
    W = W.at[0, 0:2 * D, :].set(w_e1)                         # encoder L1: rows = [given|gen]
    W = W.at[1, :, 0:H2].set(w_e2)                            # encoder L2
    W = W.at[2, 0:H2, D:D + L].set(w_mu)                      # fused head: mu columns
    W = W.at[2, 0:H2, D + L:D + 2 * L].set(w_lv)              #             logvar columns
    W = W.at[3, 0:D, 0:H2].set(w_d1[L:L + D])                 # decoder L1: given rows
    W = W.at[3, D:D + L, 0:H2].set(w_d1[0:L])                 # decoder L1: z rows (mu path)
    W = W.at[3, D + L:D + 2 * L, 0:H2].set(w_d1[0:L])         # decoder L1: z rows (eps*std path)
    W = W.at[4, 0:H2, :].set(w_d2)                            # decoder L2
    W = W.at[5, :, 0:D].set(w_d3)                             # decoder L3 (recon)
    W = W.reshape(N_W_BLOCKS * LANES, LANES)

    Bm = jnp.zeros((N_B_ROWS, LANES), jnp.float32)
    Bm = Bm.at[0, :].set(b_e1.reshape(-1))
    Bm = Bm.at[1, 0:H2].set(b_e2.reshape(-1))
    Bm = Bm.at[2, D:D + L].set(b_mu.reshape(-1))
    Bm = Bm.at[2, D + L:D + 2 * L].set(b_lv.reshape(-1))
    Bm = Bm.at[3, 0:H2].set(b_d1.reshape(-1))
    Bm = Bm.at[4, :].set(b_d2.reshape(-1))
    Bm = Bm.at[5, 0:D].set(b_d3.reshape(-1))
    return W, Bm


# ----------------------------------------------------------------------------- wrapper


@functools.partial(jax.jit, static_argnames=("tile_b",))
def cvae_forward(params, given_rect, generated_rect, eps, *, tile_b=1024):
    B, D = given_rect.shape
    L = eps.shape[1]

    W, Bm = _pack_params(params, D, L)

    # batch tiling (multiple of 8 sublanes); pad batch up to a whole number of tiles
    tb = min(tile_b, _round_up(B, 8))
    tb = max(8, (tb // 8) * 8)
    b_pad = _round_up(B, tb)

    # single lane-dense input slab: [given | gen | ... | eps | 0]
    x = jnp.zeros((b_pad, LANES), jnp.float32)
    x = x.at[:B, 0:D].set(given_rect.astype(jnp.float32))
    x = x.at[:B, D:2 * D].set(generated_rect.astype(jnp.float32))
    x = x.at[:B, D + L:D + 2 * L].set(eps.astype(jnp.float32))

    kernel = functools.partial(_cvae_kernel, input_dim=D, latent_dim=L)

    flops = 2 * b_pad * LANES * LANES * N_W_BLOCKS
    bytes_accessed = (x.size + W.size + Bm.size + b_pad * LANES) * 4

    out = pl.pallas_call(
        kernel,
        out_shape=jax.ShapeDtypeStruct((b_pad, LANES), jnp.float32),
        grid=(b_pad // tb,),
        in_specs=[
            pl.BlockSpec((tb, LANES), lambda i: (i, 0)),                  # packed activations
            pl.BlockSpec((N_W_BLOCKS * LANES, LANES), lambda i: (0, 0)),  # weight slab (resident)
            pl.BlockSpec((N_B_ROWS, LANES), lambda i: (0, 0)),            # bias slab (resident)
        ],
        out_specs=pl.BlockSpec((tb, LANES), lambda i: (i, 0)),
        compiler_params=pltpu.CompilerParams(
            dimension_semantics=("parallel",),
        ),
        cost_estimate=pl.CostEstimate(
            flops=flops,
            transcendentals=b_pad * LANES,
            bytes_accessed=bytes_accessed,
        ),
    )(x, W, Bm)

    recon = out[:B, 0:D]
    mu = out[:B, D:D + L]
    logvar = out[:B, D + L:D + 2 * L]
    return recon, mu, logvar


# ----------------------------------------------------------------------------- reference


def cvae_forward_ref(params, given_rect, generated_rect, eps):
    def lin(p, x):
        w, b = p
        return x @ w + b

    x = jnp.concatenate([given_rect, generated_rect], axis=1)
    h = jax.nn.relu(lin(params["e1"], x))
    h = jax.nn.relu(lin(params["e2"], h))
    mu = lin(params["mu"], h)
    logvar = lin(params["lv"], h)
    std = jnp.exp(0.5 * logvar)
    z = mu + eps * std
    zc = jnp.concatenate([z, given_rect], axis=1)
    d = jax.nn.relu(lin(params["d1"], zc))
    d = jax.nn.relu(lin(params["d2"], d))
    recon = lin(params["d3"], d)
    return recon, mu, logvar


# ----------------------------------------------------------------------------- main


if __name__ == "__main__":
    key = jax.random.PRNGKey(0)
    k_params, k_given, k_gen, k_eps = jax.random.split(key, 4)

    params = init_cvae_params(k_params)

    # small deterministic batch (eps is the torch.randn_like noise, passed explicitly)
    B = 8
    given_rect = jax.random.normal(k_given, (B, INPUT_DIM), jnp.float32)
    generated_rect = jax.random.normal(k_gen, (B, INPUT_DIM), jnp.float32)
    eps = jax.random.normal(k_eps, (B, LATENT_DIM), jnp.float32)

    recon, mu, logvar = cvae_forward(params, given_rect, generated_rect, eps)
    jax.block_until_ready((recon, mu, logvar))

    recon_r, mu_r, logvar_r = cvae_forward_ref(params, given_rect, generated_rect, eps)
    assert recon.shape == (B, INPUT_DIM)
    assert mu.shape == (B, LATENT_DIM)
    assert logvar.shape == (B, LATENT_DIM)
    assert jnp.allclose(recon, recon_r, atol=1e-4, rtol=1e-4)
    assert jnp.allclose(mu, mu_r, atol=1e-4, rtol=1e-4)
    assert jnp.allclose(logvar, logvar_r, atol=1e-4, rtol=1e-4)

    # larger, non-multiple-of-tile batch to exercise the grid / padding path
    B2 = 300
    k2a, k2b, k2c = jax.random.split(jax.random.PRNGKey(1), 3)
    g2 = jax.random.normal(k2a, (B2, INPUT_DIM), jnp.float32)
    r2 = jax.random.normal(k2b, (B2, INPUT_DIM), jnp.float32)
    e2 = jax.random.normal(k2c, (B2, LATENT_DIM), jnp.float32)
    recon2, mu2, logvar2 = cvae_forward(params, g2, r2, e2, tile_b=128)
    jax.block_until_ready((recon2, mu2, logvar2))
    recon2_r, mu2_r, logvar2_r = cvae_forward_ref(params, g2, r2, e2)
    assert jnp.allclose(recon2, recon2_r, atol=1e-4, rtol=1e-4)
    assert jnp.allclose(mu2, mu2_r, atol=1e-4, rtol=1e-4)
    assert jnp.allclose(logvar2, logvar2_r, atol=1e-4, rtol=1e-4)

    print("KERNEL_OK")
</pallas_src>

<mosaic_0001>
module attributes {stable_mosaic.version = 11 : i64} {
  func.func @_cvae_kernel(%arg0: i32, %arg1: memref<8x128xf32, #tpu.memory_space<vmem>>, %arg2: memref<768x128xf32, #tpu.memory_space<vmem>>, %arg3: memref<8x128xf32, #tpu.memory_space<vmem>>, %arg4: memref<8x128xf32, #tpu.memory_space<vmem>>) attributes {dimension_semantics = [#tpu.dimension_semantics<parallel>], iteration_bounds = array<i64: 1>, scalar_prefetch = 0 : i64, scratch_operands = 0 : i64, tpu.core_type = #tpu.core_type<tc>, window_params = [{transform_indices = @transform_0, window_bounds = array<i64: 8, 128>}, {pipeline_mode = #tpu.pipeline_mode<synchronous>, transform_indices = @transform_1, window_bounds = array<i64: 768, 128>}, {pipeline_mode = #tpu.pipeline_mode<synchronous>, transform_indices = @transform_2, window_bounds = array<i64: 8, 128>}, {transform_indices = @transform_3, window_bounds = array<i64: 8, 128>}]} {
    %c0 = arith.constant 0 : index
    %c0_0 = arith.constant 0 : index
    %0 = vector.load %arg1[%c0, %c0_0] : memref<8x128xf32, #tpu.memory_space<vmem>>, vector<8x128xf32>
    %c0_1 = arith.constant 0 : index
    %c0_2 = arith.constant 0 : index
    %1 = vector.load %arg2[%c0_1, %c0_2] : memref<768x128xf32, #tpu.memory_space<vmem>>, vector<128x128xf32>
    %cst = arith.constant dense<0.000000e+00> : vector<8x128xf32>
    %2 = tpu.matmul %0, %1, %cst {dimension_numbers = #tpu.dot_dimension_numbers<[1], [0], [0], [1], [0, 0, 1, 1], [], []>} : vector<8x128xf32>, vector<128x128xf32>, vector<8x128xf32> -> vector<8x128xf32>
    %c0_3 = arith.constant 0 : index
    %c0_4 = arith.constant 0 : index
    %3 = vector.load %arg3[%c0_3, %c0_4] : memref<8x128xf32, #tpu.memory_space<vmem>>, vector<1x128xf32>
    %4 = vector.broadcast %3 : vector<1x128xf32> to vector<8x128xf32>
    %5 = arith.addf %2, %4 : vector<8x128xf32>
    %cst_5 = arith.constant 0.000000e+00 : f32
    %6 = vector.broadcast %cst_5 : f32 to vector<8x128xf32>
    %7 = arith.maximumf %5, %6 : vector<8x128xf32>
    %c128 = arith.constant 128 : index
    %c0_6 = arith.constant 0 : index
    %8 = vector.load %arg2[%c128, %c0_6] : memref<768x128xf32, #tpu.memory_space<vmem>>, vector<128x128xf32>
    %cst_7 = arith.constant dense<0.000000e+00> : vector<8x128xf32>
    %9 = tpu.matmul %7, %8, %cst_7 {dimension_numbers = #tpu.dot_dimension_numbers<[1], [0], [0], [1], [0, 0, 1, 1], [], []>} : vector<8x128xf32>, vector<128x128xf32>, vector<8x128xf32> -> vector<8x128xf32>
    %c1 = arith.constant 1 : index
    %c0_8 = arith.constant 0 : index
    %10 = vector.load %arg3[%c1, %c0_8] : memref<8x128xf32, #tpu.memory_space<vmem>>, vector<1x128xf32>
    %11 = vector.broadcast %10 : vector<1x128xf32> to vector<8x128xf32>
    %12 = arith.addf %9, %11 : vector<8x128xf32>
    %cst_9 = arith.constant 0.000000e+00 : f32
    %13 = vector.broadcast %cst_9 : f32 to vector<8x128xf32>
    %14 = arith.maximumf %12, %13 : vector<8x128xf32>
    %c256 = arith.constant 256 : index
    %c0_10 = arith.constant 0 : index
    %15 = vector.load %arg2[%c256, %c0_10] : memref<768x128xf32, #tpu.memory_space<vmem>>, vector<128x128xf32>
    %cst_11 = arith.constant dense<0.000000e+00> : vector<8x128xf32>
    %16 = tpu.matmul %14, %15, %cst_11 {dimension_numbers = #tpu.dot_dimension_numbers<[1], [0], [0], [1], [0, 0, 1, 1], [], []>} : vector<8x128xf32>, vector<128x128xf32>, vector<8x128xf32> -> vector<8x128xf32>
    %c2 = arith.constant 2 : index
    %c0_12 = arith.constant 0 : index
    %17 = vector.load %arg3[%c2, %c0_12] : memref<8x128xf32, #tpu.memory_space<vmem>>, vector<1x128xf32>
    %18 = vector.broadcast %17 : vector<1x128xf32> to vector<8x128xf32>
    %19 = arith.addf %16, %18 : vector<8x128xf32>
    %20 = tpu.iota {dimensions = array<i32: 1>} : vector<1x128xi32>
    %c12_i32 = arith.constant 12 : i32
    %21 = vector.broadcast %c12_i32 : i32 to vector<1x128xi32>
    %22 = arith.cmpi sge, %20, %21 : vector<1x128xi32>
    %c20_i32 = arith.constant 20 : i32
    %23 = vector.broadcast %c20_i32 : i32 to vector<1x128xi32>
    %24 = arith.cmpi slt, %20, %23 : vector<1x128xi32>
    %25 = arith.andi %22, %24 : vector<1x128xi1>
    %cst_13 = arith.constant 5.000000e-01 : f32
    %26 = vector.broadcast %cst_13 : f32 to vector<8x128xf32>
    %27 = arith.mulf %26, %19 : vector<8x128xf32>
    %28 = math.exp %27 : vector<8x128xf32>
    %29 = arith.mulf %0, %28 : vector<8x128xf32>
    %c4_i32 = arith.constant 4 : i32
    %30 = vector.broadcast %c4_i32 : i32 to vector<1x128xi32>
    %31 = arith.cmpi slt, %20, %30 : vector<1x128xi32>
    %32 = vector.shape_cast %31 : vector<1x128xi1> to vector<1x128xi1>
    %33 = vector.broadcast %32 : vector<1x128xi1> to vector<8x128xi1>
    %34 = arith.select %33, %0, %19 : vector<8x128xi1>, vector<8x128xf32>
    %35 = vector.shape_cast %25 : vector<1x128xi1> to vector<1x128xi1>
    %36 = vector.broadcast %35 : vector<1x128xi1> to vector<8x128xi1>
    %37 = arith.select %36, %29, %34 : vector<8x128xi1>, vector<8x128xf32>
    %c384 = arith.constant 384 : index
    %c0_14 = arith.constant 0 : index
    %38 = vector.load %arg2[%c384, %c0_14] : memref<768x128xf32, #tpu.memory_space<vmem>>, vector<128x128xf32>
    %cst_15 = arith.constant dense<0.000000e+00> : vector<8x128xf32>
    %39 = tpu.matmul %37, %38, %cst_15 {dimension_numbers = #tpu.dot_dimension_numbers<[1], [0], [0], [1], [0, 0, 1, 1], [], []>} : vector<8x128xf32>, vector<128x128xf32>, vector<8x128xf32> -> vector<8x128xf32>
    %c3 = arith.constant 3 : index
    %c0_16 = arith.constant 0 : index
    %40 = vector.load %arg3[%c3, %c0_16] : memref<8x128xf32, #tpu.memory_space<vmem>>, vector<1x128xf32>
    %41 = vector.broadcast %40 : vector<1x128xf32> to vector<8x128xf32>
    %42 = arith.addf %39, %41 : vector<8x128xf32>
    %cst_17 = arith.constant 0.000000e+00 : f32
    %43 = vector.broadcast %cst_17 : f32 to vector<8x128xf32>
    %44 = arith.maximumf %42, %43 : vector<8x128xf32>
    %c512 = arith.constant 512 : index
    %c0_18 = arith.constant 0 : index
    %45 = vector.load %arg2[%c512, %c0_18] : memref<768x128xf32, #tpu.memory_space<vmem>>, vector<128x128xf32>
    %cst_19 = arith.constant dense<0.000000e+00> : vector<8x128xf32>
    %46 = tpu.matmul %44, %45, %cst_19 {dimension_numbers = #tpu.dot_dimension_numbers<[1], [0], [0], [1], [0, 0, 1, 1], [], []>} : vector<8x128xf32>, vector<128x128xf32>, vector<8x128xf32> -> vector<8x128xf32>
    %c4 = arith.constant 4 : index
    %c0_20 = arith.constant 0 : index
    %47 = vector.load %arg3[%c4, %c0_20] : memref<8x128xf32, #tpu.memory_space<vmem>>, vector<1x128xf32>
    %48 = vector.broadcast %47 : vector<1x128xf32> to vector<8x128xf32>
    %49 = arith.addf %46, %48 : vector<8x128xf32>
    %cst_21 = arith.constant 0.000000e+00 : f32
    %50 = vector.broadcast %cst_21 : f32 to vector<8x128xf32>
    %51 = arith.maximumf %49, %50 : vector<8x128xf32>
    %c640 = arith.constant 640 : index
    %c0_22 = arith.constant 0 : index
    %52 = vector.load %arg2[%c640, %c0_22] : memref<768x128xf32, #tpu.memory_space<vmem>>, vector<128x128xf32>
    %cst_23 = arith.constant dense<0.000000e+00> : vector<8x128xf32>
    %53 = tpu.matmul %51, %52, %cst_23 {dimension_numbers = #tpu.dot_dimension_numbers<[1], [0], [0], [1], [0, 0, 1, 1], [], []>} : vector<8x128xf32>, vector<128x128xf32>, vector<8x128xf32> -> vector<8x128xf32>
    %c5 = arith.constant 5 : index
    %c0_24 = arith.constant 0 : index
    %54 = vector.load %arg3[%c5, %c0_24] : memref<8x128xf32, #tpu.memory_space<vmem>>, vector<1x128xf32>
    %55 = vector.broadcast %54 : vector<1x128xf32> to vector<8x128xf32>
    %56 = arith.addf %53, %55 : vector<8x128xf32>
    %57 = arith.addf %56, %19 : vector<8x128xf32>
    %c0_25 = arith.constant 0 : index
    %c0_26 = arith.constant 0 : index
    %58 = vector.load %arg4[%c0_25, %c0_26] : memref<8x128xf32, #tpu.memory_space<vmem>>, vector<8x128xf32>
    tpu.vector_store %arg4[%c0_25, %c0_26], %57 {strides = array<i32>} : memref<8x128xf32, #tpu.memory_space<vmem>>, vector<8x128xf32>,
    return
  }
  func.func @transform_0(%arg0: i32) -> (i32, i32) {
    %c0_i32 = arith.constant 0 : i32
    %c0_i32_0 = arith.constant 0 : i32
    return %arg0, %c0_i32 : i32, i32
  }
  func.func @transform_1(%arg0: i32) -> (i32, i32) {
    %c0_i32 = arith.constant 0 : i32
    %c0_i32_0 = arith.constant 0 : i32
    %c0_i32_1 = arith.constant 0 : i32
    return %c0_i32, %c0_i32_0 : i32, i32
  }
  func.func @transform_2(%arg0: i32) -> (i32, i32) {
    %c0_i32 = arith.constant 0 : i32
    %c0_i32_0 = arith.constant 0 : i32
    %c0_i32_1 = arith.constant 0 : i32
    return %c0_i32, %c0_i32_0 : i32, i32
  }
  func.func @transform_3(%arg0: i32) -> (i32, i32) {
    %c0_i32 = arith.constant 0 : i32
    %c0_i32_0 = arith.constant 0 : i32
    return %arg0, %c0_i32 : i32, i32
  }
}

</mosaic_0001>

<bundles_post_ra>
// kernel: cvae_forward.1
= control target key start
LH: loop header
LB: loop body
LE: loop exit
PB: predicated region body
PF: predicated region fallthrough
CT: control target
= control target key end

     0   :  { %v1054_v0 = vmov 0.0|0.0   ;;  %vm1055_vm0 = vmmov 0   ;;  %v1056_v4 = vmov 0.0   ;;  %s1459_s1 = inlined_call_operand.vmem [shape: f32[768,128], index: 1, kind: input, shape index: {}]   ;;  %s1460_s0 = inlined_call_operand.vmem [shape: f32[8,128], index: 0, kind: input, shape index: {}]   ;;  %s1461_s2 = inlined_call_operand.vmem [shape: f32[8,128], index: 2, kind: input, shape index: {}]   ;;  %s1462_s3 = inlined_call_operand.vmem [shape: f32[8,128], index: 3, kind: output, shape index: {}]  }
   0x1   :  { %905 = vmatprep.subr.bf16.mxu0 %v1054_v0  ;;  %v15_v1 = vld [vmem:[%s1459_s1] sm:$0xff]  ;;  %v16_v2 = vld [vmem:[%s1459_s1 + $0x8] sm:$0xff]  ;;  %v17_v3 = vld [vmem:[%s1459_s1 + $0x10] sm:$0xff]  ;;  %727 = vmatprep.mubr.msk.f32.mxu0 %vm1055_vm0, %v1056_v4 }
   0x2   :  { %v906_v5 = vpack.c.bf16 %v16_v2, %v15_v1  ;;  %v18_v6 = vld [vmem:[%s1459_s1 + $0x18] sm:$0xff]  ;;  %929 = vmatprep.subr.bf16.mxu1 %v1054_v0  ;;  %762 = vmatprep.mubr.msk.f32.mxu1 %vm1055_vm0, %v1056_v4  ;;  %v19_v8 = vld [vmem:[%s1459_s1 + $0x20] sm:$0xff]  ;;  %v20_v9 = vld [vmem:[%s1459_s1 + $0x28] sm:$0xff] }
   0x3   :  { %v909_v7 = vpack.c.bf16 %v18_v6, %v17_v3  ;;  %v107_v10 = vld [vmem:[%s1459_s1 + $0x80] sm:$0xff]  ;;  %v108_v11 = vld [vmem:[%s1459_s1 + $0x88] sm:$0xff]  ;;  %v109_v12 = vld [vmem:[%s1459_s1 + $0x90] sm:$0xff]  ;;  %v912_v14 = vpack.c.bf16 %v20_v9, %v19_v8 }
   0x4   :  { %907 = vmatpush3.bf16.msra.mxu0 %v906_v5  ;;  %v110_v13 = vld [vmem:[%s1459_s1 + $0x98] sm:$0xff]  ;;  %v930_v15 = vpack.c.bf16 %v108_v11, %v107_v10  ;;  %v21_v16 = vld [vmem:[%s1459_s1 + $0x30] sm:$0xff]  ;;  %v111_v19 = vld [vmem:[%s1459_s1 + $0xa0] sm:$0xff] }
   0x5   :  { %908 = vmatprep.subr.bf16.mxu0 %v1054_v0  ;;  %v22_v17 = vld [vmem:[%s1459_s1 + $0x38] sm:$0xff]  ;;  %v933_v18 = vpack.c.bf16 %v110_v13, %v109_v12  ;;  %v112_v20 = vld [vmem:[%s1459_s1 + $0xa8] sm:$0xff]  ;;  %v23_v22 = vld [vmem:[%s1459_s1 + $0x40] sm:$0xff] }
   0x6   :  { %931 = vmatpush3.bf16.msra.mxu1 %v930_v15  ;;  %v915_v21 = vpack.c.bf16 %v22_v17, %v21_v16  ;;  %v24_v23 = vld [vmem:[%s1459_s1 + $0x48] sm:$0xff]  ;;  %v936_v24 = vpack.c.bf16 %v112_v20, %v111_v19  ;;  %v113_v25 = vld [vmem:[%s1459_s1 + $0xb0] sm:$0xff]  ;;  %v114_v26 = vld [vmem:[%s1459_s1 + $0xb8] sm:$0xff] }
   0x7   :  { %932 = vmatprep.subr.bf16.mxu1 %v1054_v0  ;;  %v918_v27 = vpack.c.bf16 %v24_v23, %v23_v22  ;;  %v25_v28 = vld [vmem:[%s1459_s1 + $0x50] sm:$0xff]  ;;  %v26_v29 = vld [vmem:[%s1459_s1 + $0x58] sm:$0xff]  ;;  %v939_v30 = vpack.c.bf16 %v114_v26, %v113_v25  ;;  %v115_v31 = vld [vmem:[%s1459_s1 + $0xc0] sm:$0xff] }
   0x8   :  { %910 = vmatpush3.bf16.msra.mxu0 %v909_v7  ;;  %v116_v32 = vld [vmem:[%s1459_s1 + $0xc8] sm:$0xff]  ;;  %v921_v33 = vpack.c.bf16 %v26_v29, %v25_v28  ;;  %v27_v34 = vld [vmem:[%s1459_s1 + $0x60] sm:$0xff]  ;;  %v117_v37 = vld [vmem:[%s1459_s1 + $0xd0] sm:$0xff] }
   0x9   :  { %911 = vmatprep.subr.bf16.mxu0 %v1054_v0  ;;  %v28_v35 = vld [vmem:[%s1459_s1 + $0x68] sm:$0xff]  ;;  %v942_v36 = vpack.c.bf16 %v116_v32, %v115_v31  ;;  %v118_v38 = vld [vmem:[%s1459_s1 + $0xd8] sm:$0xff]  ;;  %v29_v40 = vld [vmem:[%s1459_s1 + $0x70] sm:$0xff] }
   0xa   :  { %934 = vmatpush3.bf16.msra.mxu1 %v933_v18  ;;  %v924_v39 = vpack.c.bf16 %v28_v35, %v27_v34  ;;  %v30_v41 = vld [vmem:[%s1459_s1 + $0x78] sm:$0xff]  ;;  %v945_v42 = vpack.c.bf16 %v118_v38, %v117_v37  ;;  %v119_v43 = vld [vmem:[%s1459_s1 + $0xe0] sm:$0xff]  ;;  %v120_v44 = vld [vmem:[%s1459_s1 + $0xe8] sm:$0xff] }
   0xb   :  { %935 = vmatprep.subr.bf16.mxu1 %v1054_v0  ;;  %v927_v45 = vpack.c.bf16 %v30_v41, %v29_v40  ;;  %v948_v46 = vpack.c.bf16 %v120_v44, %v119_v43  ;;  %v1189_v47 = vld [vmem:[%s1460_s0] sm:$0xff]  ;;  %v121_v48 = vld [vmem:[%s1459_s1 + $0xf0] sm:$0xff]  ;;  %v122_v49 = vld [vmem:[%s1459_s1 + $0xf8] sm:$0xff] }
   0xc   :  { %913 = vmatpush3.bf16.msra.mxu0 %v912_v14  ;;  %v951_v50 = vpack.c.bf16 %v122_v49, %v121_v48  ;;  %v199_v51 = vld [vmem:[%s1459_s1 + $0x100] sm:$0xff]  ;;  %v200_v52 = vld [vmem:[%s1459_s1 + $0x108] sm:$0xff]  ;;  %v201_v53 = vld [vmem:[%s1459_s1 + $0x110] sm:$0xff] }
   0xd   :  { %914 = vmatprep.subr.bf16.mxu0 %v1054_v0  ;;  %v954_v54 = vpack.c.bf16 %v200_v52, %v199_v51  ;;  %v202_v55 = vld [vmem:[%s1459_s1 + $0x118] sm:$0xff]  ;;  %v203_v57 = vld [vmem:[%s1459_s1 + $0x120] sm:$0xff]  ;;  %v204_v58 = vld [vmem:[%s1459_s1 + $0x128] sm:$0xff] }
   0xe   :  { %937 = vmatpush3.bf16.msra.mxu1 %v936_v24  ;;  %v957_v56 = vpack.c.bf16 %v202_v55, %v201_v53  ;;  %v960_v59 = vpack.c.bf16 %v204_v58, %v203_v57  ;;  %v205_v60 = vld [vmem:[%s1459_s1 + $0x130] sm:$0xff]  ;;  %v206_v61 = vld [vmem:[%s1459_s1 + $0x138] sm:$0xff]  ;;  %v207_v63 = vld [vmem:[%s1459_s1 + $0x140] sm:$0xff] }
   0xf   :  { %938 = vmatprep.subr.bf16.mxu1 %v1054_v0  ;;  %v963_v62 = vpack.c.bf16 %v206_v61, %v205_v60  ;;  %v208_v1 = vld [vmem:[%s1459_s1 + $0x148] sm:$0xff]  ;;  %v209_v3 = vld [vmem:[%s1459_s1 + $0x150] sm:$0xff]  ;;  %v210_v5 = vld [vmem:[%s1459_s1 + $0x158] sm:$0xff] }
  0x10   :  { %916 = vmatpush3.bf16.msra.mxu0 %v915_v21  ;;  %v966_v2 = vpack.c.bf16 %v208_v1, %v207_v63  ;;  %v969_v6 = vpack.c.bf16 %v210_v5, %v209_v3  ;;  %v211_v7 = vld [vmem:[%s1459_s1 + $0x160] sm:$0xff]  ;;  %v212_v8 = vld [vmem:[%s1459_s1 + $0x168] sm:$0xff]  ;;  %v213_v15 = vld [vmem:[%s1459_s1 + $0x170] sm:$0xff] }
  0x11   :  { %917 = vmatprep.subr.bf16.mxu0 %v1054_v0  ;;  %v972_v9 = vpack.c.bf16 %v212_v8, %v211_v7  ;;  %v587_v10 = vld [vmem:[%s1461_s2] ss:$0 sm:$0xff]  ;;  %v214_v16 = vld [vmem:[%s1459_s1 + $0x178] sm:$0xff]  ;;  %v307_v19 = vld [vmem:[%s1459_s1 + $0x188] sm:$0xff] }
  0x12   :  { %940 = vmatpush3.bf16.msra.mxu1 %v939_v30  ;;  %v975_v17 = vpack.c.bf16 %v214_v16, %v213_v15  ;;  %v306_v18 = vld [vmem:[%s1459_s1 + $0x180] sm:$0xff]  ;;  %v308_v20 = vld [vmem:[%s1459_s1 + $0x190] sm:$0xff]  ;;  %v309_v22 = vld [vmem:[%s1459_s1 + $0x198] sm:$0xff] }
  0x13   :  { %941 = vmatprep.subr.bf16.mxu1 %v1054_v0  ;;  %v978_v21 = vpack.c.bf16 %v307_v19, %v306_v18  ;;  %v981_v23 = vpack.c.bf16 %v309_v22, %v308_v20  ;;  %v310_v24 = vld [vmem:[%s1459_s1 + $0x1a0] sm:$0xff]  ;;  %v311_v25 = vld [vmem:[%s1459_s1 + $0x1a8] sm:$0xff]  ;;  %v312_v32 = vld [vmem:[%s1459_s1 + $0x1b0] sm:$0xff] }
  0x14   :  { %919 = vmatpush3.bf16.msra.mxu0 %v918_v27  ;;  %v984_v26 = vpack.c.bf16 %v311_v25, %v310_v24  ;;  %v588_v27 = vld [vmem:[%s1461_s2 + $0x1] ss:$0 sm:$0xff]  ;;  %v316_v38 = vld [vmem:[%s1459_s1 + $0x1d0] sm:$0xff]  ;;  %v399_v49 = vld [vmem:[%s1459_s1 + $0x208] sm:$0xff] }
  0x15   :  { %920 = vmatprep.subr.bf16.mxu0 %v1054_v0  ;;  %v314_v35 = vld [vmem:[%s1459_s1 + $0x1c0] sm:$0xff]  ;;  %v320_v44 = vld [vmem:[%s1459_s1 + $0x1f0] sm:$0xff]  ;;  %v401_v52 = vld [vmem:[%s1459_s1 + $0x218] sm:$0xff] }
  0x16   :  { %943 = vmatpush3.bf16.msra.mxu1 %v942_v36  ;;  %v315_v36 = vld [vmem:[%s1459_s1 + $0x1c8] sm:$0xff]  ;;  %v318_v40 = vld [vmem:[%s1459_s1 + $0x1e0] sm:$0xff]  ;;  %v404_v57 = vld [vmem:[%s1459_s1 + $0x230] sm:$0xff] }
  0x17   :  { %944 = vmatprep.subr.bf16.mxu1 %v1054_v0  ;;  %v990_v37 = vpack.c.bf16 %v315_v36, %v314_v35  ;;  %v398_v48 = vld [vmem:[%s1459_s1 + $0x200] sm:$0xff]  ;;  %v403_v55 = vld [vmem:[%s1459_s1 + $0x228] sm:$0xff]  ;;  %v405_v58 = vld [vmem:[%s1459_s1 + $0x238] sm:$0xff] }
  0x18   :  { %922 = vmatpush3.bf16.msra.mxu0 %v921_v33  ;;  %v313_v33 = vld [vmem:[%s1459_s1 + $0x1b8] sm:$0xff]  ;;  %v1002_v51 = vpack.c.bf16 %v399_v49, %v398_v48  ;;  %v406_v60 = vld [vmem:[%s1459_s1 + $0x240] sm:$0xff]  ;;  %v407_v61 = vld [vmem:[%s1459_s1 + $0x248] sm:$0xff] }
  0x19   :  { %923 = vmatprep.subr.bf16.mxu0 %v1054_v0  ;;  %v987_v34 = vpack.c.bf16 %v313_v33, %v312_v32  ;;  %v408_v63 = vld [vmem:[%s1459_s1 + $0x250] sm:$0xff]  ;;  %v409_v1 = vld [vmem:[%s1459_s1 + $0x258] sm:$0xff]  ;;  %v410_v3 = vld [vmem:[%s1459_s1 + $0x260] sm:$0xff] }
  0x1a   :  { %946 = vmatpush3.bf16.msra.mxu1 %v945_v42  ;;  %v319_v42 = vld [vmem:[%s1459_s1 + $0x1e8] sm:$0xff]  ;;  %v589_v7 = vld [vmem:[%s1461_s2 + $0x2] ss:$0 sm:$0xff]  ;;  %v412_v19 = vld [vmem:[%s1459_s1 + $0x270] sm:$0xff] }
  0x1b   :  { %947 = vmatprep.subr.bf16.mxu1 %v1054_v0  ;;  %v996_v43 = vpack.c.bf16 %v319_v42, %v318_v40  ;;  %v411_v5 = vld [vmem:[%s1459_s1 + $0x268] sm:$0xff]  ;;  %v413_v20 = vld [vmem:[%s1459_s1 + $0x278] sm:$0xff]  ;;  %v490_v22 = vld [vmem:[%s1459_s1 + $0x280] sm:$0xff] }
  0x1c   :  { %925 = vmatpush3.bf16.msra.mxu0 %v924_v39  ;;  %v317_v39 = vld [vmem:[%s1459_s1 + $0x1d8] sm:$0xff]  ;;  %v498_v32 = vld [vmem:[%s1459_s1 + $0x2c0] sm:$0xff]  ;;  %v499_v33 = vld [vmem:[%s1459_s1 + $0x2c8] sm:$0xff] }
  0x1d   :  { %926 = vmatprep.subr.bf16.mxu0 %v1054_v0  ;;  %v993_v41 = vpack.c.bf16 %v317_v39, %v316_v38  ;;  %v493_v24 = vld [vmem:[%s1459_s1 + $0x298] sm:$0xff]  ;;  %v500_v35 = vld [vmem:[%s1459_s1 + $0x2d0] sm:$0xff]  ;;  %v502_v38 = vld [vmem:[%s1459_s1 + $0x2e0] sm:$0xff] }
  0x1e   :  { %949 = vmatpush3.bf16.msra.mxu1 %v948_v46  ;;  %v501_v36 = vld [vmem:[%s1459_s1 + $0x2d8] sm:$0xff]  ;;  %v503_v39 = vld [vmem:[%s1459_s1 + $0x2e8] sm:$0xff] }
  0x1f   :  { %950 = vmatprep.subr.bf16.mxu1 %v1054_v0  ;;  %v1044_v40 = vpack.c.bf16 %v503_v39, %v502_v38  ;;  %v505_v48 = vld [vmem:[%s1459_s1 + $0x2f8] sm:$0xff] }
  0x20   :  { %928 = vmatpush3.bf16.msra.mxu0 %v927_v45  ;;  %v321_v45 = vld [vmem:[%s1459_s1 + $0x1f8] sm:$0xff] }
  0x21   :  { %953 = vmatprep.subr.bf16.mxu0 %v1054_v0  ;;  %v999_v46 = vpack.c.bf16 %v321_v45, %v320_v44 }
  0x22   :  { %952 = vmatpush3.bf16.msra.mxu1 %v951_v50  ;;  %v400_v50 = vld [vmem:[%s1459_s1 + $0x210] sm:$0xff] }
  0x23   :  { %728 = vmatmul.mubr.f32.vlgmr.msra.gmra.mrb[0].mxu0 %v1189_v47  ;;  %977 = vmatprep.subr.bf16.mxu1 %v1054_v0  ;;  %v1005_v53 = vpack.c.bf16 %v401_v52, %v400_v50 }
  0x24   :  { %797 = vmatprep.mubr.msk.f32.mxu0 %vm1055_vm0, %v1056_v4  ;;  %955 = vmatpush3.bf16.msra.mxu0 %v954_v54  ;;  %v402_v54 = vld [vmem:[%s1459_s1 + $0x220] sm:$0xff] }
  0x25   :  { %956 = vmatprep.subr.bf16.mxu0 %v1054_v0 }
  0x28   :  { %958 = vmatpush3.bf16.msra.mxu0 %v957_v56  ;;  %v1008_v56 = vpack.c.bf16 %v403_v55, %v402_v54  ;;  %v592_v54 = vld [vmem:[%s1461_s2 + $0x5] ss:$0 sm:$0xff] }
  0x29   :  { %959 = vmatprep.subr.bf16.mxu0 %v1054_v0 }
  0x2c   :  { %961 = vmatpush3.bf16.msra.mxu0 %v960_v59  ;;  %v1011_v59 = vpack.c.bf16 %v405_v58, %v404_v57 }
  0x2d   :  { %962 = vmatprep.subr.bf16.mxu0 %v1054_v0 }
  0x30   :  { %964 = vmatpush3.bf16.msra.mxu0 %v963_v62  ;;  %v1014_v62 = vpack.c.bf16 %v407_v61, %v406_v60 }
  0x31   :  { %965 = vmatprep.subr.bf16.mxu0 %v1054_v0 }
  0x34   :  { %967 = vmatpush3.bf16.msra.mxu0 %v966_v2  ;;  %v1017_v2 = vpack.c.bf16 %v409_v1, %v408_v63 }
  0x35   :  { %968 = vmatprep.subr.bf16.mxu0 %v1054_v0 }
  0x38   :  { %970 = vmatpush3.bf16.msra.mxu0 %v969_v6  ;;  %v1020_v6 = vpack.c.bf16 %v411_v5, %v410_v3 }
  0x39   :  { %971 = vmatprep.subr.bf16.mxu0 %v1054_v0 }
  0x3c   :  { %973 = vmatpush3.bf16.msra.mxu0 %v972_v9 }
  0x3d   :  { %974 = vmatprep.subr.bf16.mxu0 %v1054_v0 }
  0x40   :  { %976 = vmatpush3.bf16.msra.mxu0 %v975_v17 }
  0x41   :  { %1001 = vmatprep.subr.bf16.mxu0 %v1054_v0 }
  0xf6   :  { %v102_v11 = vpop.f32.mrb[0].mxu0 }
  0xf7   :  { %v103_v12 = vadd.f32 %v587_v10, %v102_v11  ;;  %v729_v13 = vpop.f32.mrb[1].mxu0 }
  0xf8   :  { %v290_v13 = vlaneseq }
  0xf9   :  { %v106_v14 = vmax.f32 %v103_v12, 0.0 }
  0xfb   :  { %763 = vmatmul.mubr.f32.vlgmr.msra.gmra.mrb[0].mxu1 %v106_v14  ;;  %v291_v14 = vand.u32 127, %v290_v13 }
  0xfc   :  { %832 = vmatprep.mubr.msk.f32.mxu1 %vm1055_vm0, %v1056_v4  ;;  %979 = vmatpush3.bf16.msra.mxu1 %v978_v21  ;;  %v1023_v21 = vpack.c.bf16 %v413_v20, %v412_v19 }
  0xfd   :  { %980 = vmatprep.subr.bf16.mxu1 %v1054_v0  ;;  %vm292_vm1 = vcmp.ge.s32.totalorder %v291_v14, 12  ;;  %vm293_vm2 = vcmp.lt.s32.totalorder %v291_v14, 20  ;;  %vm299_vm3 = vcmp.lt.s32.totalorder %v291_v14, 4 }
  0xfe   :  { %vm294_vm4 = vmand %vm292_vm1, %vm293_vm2 }
 0x100   :  { %982 = vmatpush3.bf16.msra.mxu1 %v981_v23 }
 0x101   :  { %983 = vmatprep.subr.bf16.mxu1 %v1054_v0 }
 0x104   :  { %985 = vmatpush3.bf16.msra.mxu1 %v984_v26  ;;  %v494_v26 = vld [vmem:[%s1459_s1 + $0x2a0] sm:$0xff] }
 0x105   :  { %986 = vmatprep.subr.bf16.mxu1 %v1054_v0 }
 0x108   :  { %988 = vmatpush3.bf16.msra.mxu1 %v987_v34  ;;  %v1038_v34 = vpack.c.bf16 %v499_v33, %v498_v32 }
 0x109   :  { %989 = vmatprep.subr.bf16.mxu1 %v1054_v0 }
 0x10c   :  { %991 = vmatpush3.bf16.msra.mxu1 %v990_v37  ;;  %v1041_v37 = vpack.c.bf16 %v501_v36, %v500_v35 }
 0x10d   :  { %992 = vmatprep.subr.bf16.mxu1 %v1054_v0 }
 0x110   :  { %994 = vmatpush3.bf16.msra.mxu1 %v993_v41  ;;  %v590_v41 = vld [vmem:[%s1461_s2 + $0x3] ss:$0 sm:$0xff] }
 0x111   :  { %995 = vmatprep.subr.bf16.mxu1 %v1054_v0 }
 0x114   :  { %997 = vmatpush3.bf16.msra.mxu1 %v996_v43 }
 0x115   :  { %998 = vmatprep.subr.bf16.mxu1 %v1054_v0 }
 0x118   :  { %1000 = vmatpush3.bf16.msra.mxu1 %v999_v46  ;;  %v504_v46 = vld [vmem:[%s1459_s1 + $0x2f0] sm:$0xff] }
 0x119   :  { %1025 = vmatprep.subr.bf16.mxu1 %v1054_v0  ;;  %v1047_v49 = vpack.c.bf16 %v505_v48, %v504_v46 }
 0x1ce   :  { %v194_v28 = vpop.f32.mrb[0].mxu1 }
 0x1cf   :  { %v195_v29 = vadd.f32 %v588_v27, %v194_v28  ;;  %v764_v30 = vpop.f32.mrb[1].mxu1  ;;  %v495_v27 = vld [vmem:[%s1459_s1 + $0x2a8] sm:$0xff] }
 0x1d0   :  { %v1032_v28 = vpack.c.bf16 %v495_v27, %v494_v26  ;;  %v497_v30 = vld [vmem:[%s1459_s1 + $0x2b8] sm:$0xff] }
 0x1d1   :  { %v198_v31 = vmax.f32 %v195_v29, 0.0  ;;  %v496_v29 = vld [vmem:[%s1459_s1 + $0x2b0] sm:$0xff] }
 0x1d3   :  { %798 = vmatmul.mubr.f32.vlgmr.msra.gmra.mrb[2].mxu0 %v198_v31  ;;  %v1035_v31 = vpack.c.bf16 %v497_v30, %v496_v29 }
 0x1d4   :  { %867 = vmatprep.mubr.msk.f32.mxu0 %vm1055_vm0, %v1056_v4  ;;  %1003 = vmatpush3.bf16.msra.mxu0 %v1002_v51 }
 0x1d5   :  { %1004 = vmatprep.subr.bf16.mxu0 %v1054_v0 }
 0x1d8   :  { %1006 = vmatpush3.bf16.msra.mxu0 %v1005_v53 }
 0x1d9   :  { %1007 = vmatprep.subr.bf16.mxu0 %v1054_v0 }
 0x1dc   :  { %1009 = vmatpush3.bf16.msra.mxu0 %v1008_v56 }
 0x1dd   :  { %1010 = vmatprep.subr.bf16.mxu0 %v1054_v0 }
 0x1e0   :  { %1012 = vmatpush3.bf16.msra.mxu0 %v1011_v59 }
 0x1e1   :  { %1013 = vmatprep.subr.bf16.mxu0 %v1054_v0 }
 0x1e4   :  { %1015 = vmatpush3.bf16.msra.mxu0 %v1014_v62 }
 0x1e5   :  { %1016 = vmatprep.subr.bf16.mxu0 %v1054_v0 }
 0x1e8   :  { %1018 = vmatpush3.bf16.msra.mxu0 %v1017_v2 }
 0x1e9   :  { %1019 = vmatprep.subr.bf16.mxu0 %v1054_v0 }
 0x1ec   :  { %1021 = vmatpush3.bf16.msra.mxu0 %v1020_v6 }
 0x1ed   :  { %1022 = vmatprep.subr.bf16.mxu0 %v1054_v0 }
 0x1f0   :  { %1024 = vmatpush3.bf16.msra.mxu0 %v1023_v21 }
 0x2a6   :  { %v286_v8 = vpop.f32.mrb[2].mxu0 }
 0x2a7   :  { %v1377_v9 = vadd.f32 %v589_v7, %v286_v8  ;;  %v799_v10 = vpop.f32.mrb[3].mxu0 }
 0x2a9   :  { %v295_v11 = vmul.f32 0.5, %v1377_v9  ;;  %v302_v17 = vsel %vm299_vm3, %v1189_v47, %v1377_v9 }
 0x2ab   :  { %v296_v12 = vmul.f32 1.442695, %v295_v11 }
 0x2ad   :  { %1052 = vpow2.f32 %v296_v12 }
 0x2b7   :  { %v1053_v15 = vpop.eup %1052 }
 0x2b8   :  { %v298_v16 = vmul.f32 %v1053_v15, %v1189_v47  ;;  %v491_v47 = vld [vmem:[%s1459_s1 + $0x288] sm:$0xff] }
 0x2b9   :  { %v1026_v23 = vpack.c.bf16 %v491_v47, %v490_v22 }
 0x2ba   :  { %v305_v18 = vsel %vm294_vm4, %v298_v16, %v302_v17 }
 0x2bb   :  { %833 = vmatmul.mubr.f32.vlgmr.msra.gmra.mrb[2].mxu1 %v305_v18 }
 0x2bc   :  { %902 = vmatprep.mubr.msk.f32.mxu1 %vm1055_vm0, %v1056_v4  ;;  %v492_v4 = vld [vmem:[%s1459_s1 + $0x290] sm:$0xff]  ;;  %1027 = vmatpush3.bf16.msra.mxu1 %v1026_v23 }
 0x2bd   :  { %v1029_v25 = vpack.c.bf16 %v493_v24, %v492_v4  ;;  %1028 = vmatprep.subr.bf16.mxu1 %v1054_v0 }
 0x2c0   :  { %1030 = vmatpush3.bf16.msra.mxu1 %v1029_v25 }
 0x2c1   :  { %1031 = vmatprep.subr.bf16.mxu1 %v1054_v0 }
 0x2c4   :  { %1033 = vmatpush3.bf16.msra.mxu1 %v1032_v28 }
 0x2c5   :  { %1034 = vmatprep.subr.bf16.mxu1 %v1054_v0 }
 0x2c8   :  { %1036 = vmatpush3.bf16.msra.mxu1 %v1035_v31 }
 0x2c9   :  { %1037 = vmatprep.subr.bf16.mxu1 %v1054_v0 }
 0x2cc   :  { %1039 = vmatpush3.bf16.msra.mxu1 %v1038_v34 }
 0x2cd   :  { %1040 = vmatprep.subr.bf16.mxu1 %v1054_v0 }
 0x2d0   :  { %1042 = vmatpush3.bf16.msra.mxu1 %v1041_v37 }
 0x2d1   :  { %1043 = vmatprep.subr.bf16.mxu1 %v1054_v0 }
 0x2d4   :  { %1045 = vmatpush3.bf16.msra.mxu1 %v1044_v40 }
 0x2d5   :  { %1046 = vmatprep.subr.bf16.mxu1 %v1054_v0  ;;  %v591_v0 = vld [vmem:[%s1461_s2 + $0x4] ss:$0 sm:$0xff] }
 0x2d8   :  { %1048 = vmatpush3.bf16.msra.mxu1 %v1047_v49 }
 0x38e   :  { %v393_v42 = vpop.f32.mrb[2].mxu1 }
 0x38f   :  { %v394_v43 = vadd.f32 %v590_v41, %v393_v42  ;;  %v834_v44 = vpop.f32.mrb[3].mxu1 }
 0x391   :  { %v397_v45 = vmax.f32 %v394_v43, 0.0 }
 0x393   :  { %868 = vmatmul.mubr.f32.vlgmr.msra.gmra.mrb[4].mxu0 %v397_v45 }
 0x466   :  { %v485_v50 = vpop.f32.mrb[4].mxu0 }
 0x467   :  { %v486_v51 = vadd.f32 %v591_v0, %v485_v50  ;;  %v869_v52 = vpop.f32.mrb[5].mxu0 }
 0x469   :  { %v489_v53 = vmax.f32 %v486_v51, 0.0 }
 0x46b   :  { %903 = vmatmul.mubr.f32.vlgmr.msra.gmra.mrb[4].mxu1 %v489_v53 }
 0x53e   :  { %v577_v55 = vpop.f32.mrb[4].mxu1 }
 0x53f   :  { %v578_v56 = vadd.f32 %v592_v54, %v577_v55  ;;  %v904_v57 = vpop.f32.mrb[5].mxu1 }
 0x541   :  { %v581_v58 = vadd.f32 %v578_v56, %v1377_v9 }
 0x543   :  { %582 = vst [vmem:[%s1462_s3] sm:$0xff] %v581_v58 }

</bundles_post_ra>
